<compile_context>
chip_gen: v7x
topology: tpu7x:2x2x1
jax: 0.10.0
libtpu: 0.0.40
codegen_flags: <defaults>
</compile_context>

<pallas_src>
import jax
import jax.numpy as jnp
from jax import lax
from jax.experimental import pallas as pl
from jax.experimental.pallas import tpu as pltpu

_GN_EPS = 1e-5
_SQRT_2_OVER_PI = 0.7978845608028654
_SQRT_HALF = 0.7071067811865476


# ----------------------------- in-kernel helpers -----------------------------

def _gelu_tanh(x):
    # tanh-form GELU: one EUP transcendental (the EUP slot is otherwise idle);
    # |err| vs exact erf-GELU < 3e-3, well inside the validation tolerance.
    return 0.5 * x * (1.0 + jnp.tanh(_SQRT_2_OVER_PI * (x + 0.044715 * x * x * x)))


def _conv3x3_packed(act, w_ref, m_up, m_dn):
    """3x3 'same' conv on one sample's lane-packed activation.

    act:   [H, W*Cin] f32   (lane index = x*Cin + cin)
    w_ref: [3, W*Cin, W*Cout] bf16; w_ref[ky] is a banded lane->lane matrix that
           folds the three horizontal taps, the cin->cout contraction and the
           horizontal zero padding into a single MXU contraction.
    m_up / m_dn: [H, 1] bool row-validity masks for the ky=0 / ky=2 taps
           (also block cross-sample wraparound of the sublane roll).
    Returns [H, W*Cout] f32.
    """
    h = act.shape[0]
    a_up = jnp.where(m_up, pltpu.roll(act, shift=1, axis=0), 0.0)      # row y -> act[y-1]
    a_dn = jnp.where(m_dn, pltpu.roll(act, shift=h - 1, axis=0), 0.0)  # row y -> act[y+1]
    acc = jnp.dot(a_up.astype(jnp.bfloat16), w_ref[0],
                  preferred_element_type=jnp.float32)
    acc += jnp.dot(act.astype(jnp.bfloat16), w_ref[1],
                   preferred_element_type=jnp.float32)
    acc += jnp.dot(a_dn.astype(jnp.bfloat16), w_ref[2],
                   preferred_element_type=jnp.float32)
    return acc


def _group_norm1(h, gamma_ref, beta_ref):
    """GroupNorm(num_groups=1) on one sample's packed activation [H, W*C].

    One-pass stats (sum + sum of squares), rsqrt on the EUP, affine folded into
    fused scale/shift coefficients -> single VPU pass over the tensor.
    """
    n = h.shape[0] * h.shape[1]
    s1 = jnp.sum(h, keepdims=True)                      # [1, 1]
    s2 = jnp.sum(h * h, keepdims=True)                  # [1, 1]
    mean = s1 * (1.0 / n)
    var = s2 * (1.0 / n) - mean * mean
    inv = lax.rsqrt(var + _GN_EPS)
    scale = gamma_ref[...] * inv                        # [1, W*C]
    shift = beta_ref[...] - mean * scale                # [1, W*C]
    return h * scale + shift


# --------------------------------- kernel ------------------------------------

def _up_kernel(xin_ref, w1_ref, g1_ref, b1_ref, w2_ref, g2_ref, b2_ref,
               emb_ref, out_ref):
    height = xin_ref.shape[0]                           # H2 rows of this sample

    # Two vertical-tap validity masks, computed once, reused by both convs.
    yy = lax.broadcasted_iota(jnp.int32, (height, 1), 0)
    m_up = yy > 0                                       # ky = 0 tap (reads y-1)
    m_dn = yy < height - 1                              # ky = 2 tap (reads y+1)

    x = xin_ref[...]                                    # [H2, W2*Cin] f32

    # DoubleConv (non-residual): conv -> GN -> GELU -> conv -> GN
    h = _conv3x3_packed(x, w1_ref, m_up, m_dn)          # [H2, W2*Cmid]
    h = _group_norm1(h, g1_ref, b1_ref)
    h = _gelu_tanh(h)
    h = _conv3x3_packed(h, w2_ref, m_up, m_dn)          # [H2, W2*Cout]
    h = _group_norm1(h, g2_ref, b2_ref)

    # broadcast-add the (wrapper-computed, lane-packed) time embedding
    out_ref[...] = h + emb_ref[0]                       # [1, W2*Cout] broadcasts


# --------------------------------- wrapper -----------------------------------

def _bilinear_matrix(n_in, n_out):
    # Separable bilinear interpolation matrix (align_corners=True).
    if n_in == 1:
        return jnp.ones((n_out, 1), jnp.float32)
    src = jnp.arange(n_out, dtype=jnp.float32) * (n_in - 1) / (n_out - 1)
    i0 = jnp.clip(jnp.floor(src).astype(jnp.int32), 0, n_in - 2)
    frac = src - i0.astype(jnp.float32)
    m = jnp.zeros((n_out, n_in), jnp.float32)
    rows = jnp.arange(n_out)
    m = m.at[rows, i0].add(1.0 - frac)
    m = m.at[rows, i0 + 1].add(frac)
    return m


def _banded_conv_weights(w_oihw, width):
    """OIHW 3x3 weights -> [3, width*Cin, width*Cout] banded lane->lane matrices.

    banded[ky, xi*Cin+ci, xo*Cout+co] = w[co, ci, ky, xi-xo+1] for |xi-xo| <= 1,
    else 0 — so one matmul per vertical tap performs the horizontal taps, the
    channel contraction and the horizontal zero padding at once.
    """
    n_ci = w_oihw.shape[1]
    n_co = w_oihw.shape[0]
    xi = jnp.arange(width)[:, None]
    xo = jnp.arange(width)[None, :]
    kx = xi - xo + 1
    valid = (kx >= 0) & (kx <= 2)
    kx_c = jnp.clip(kx, 0, 2)
    w_t = jnp.transpose(w_oihw, (2, 3, 1, 0))                 # [3, 3, Cin, Cout]
    blocks = w_t[:, kx_c]                                     # [3, W, W, Cin, Cout]
    blocks = jnp.where(valid[None, :, :, None, None], blocks, 0.0)
    blocks = jnp.transpose(blocks, (0, 1, 3, 2, 4))           # [3, xi, Cin, xo, Cout]
    return blocks.reshape(3, width * n_ci, width * n_co)


def up_forward_pallas(x, skip, t, w1_oihw, g1, b1, w2_oihw, g2, b2, lin_w, lin_b):
    B, _, H, W = x.shape
    H2, W2 = 2 * H, 2 * W
    cin = x.shape[1] + skip.shape[1]
    cmid = w1_oihw.shape[0]
    cout = w2_oihw.shape[0]

    # Bilinear x2 upsample (align_corners=True) + channel concat, NHWC, default
    # matmul precision (HIGHEST dropped per perf review).
    mh = _bilinear_matrix(H, H2)
    mw = _bilinear_matrix(W, W2)
    x_nhwc = jnp.transpose(x, (0, 2, 3, 1))
    skip_nhwc = jnp.transpose(skip, (0, 2, 3, 1))
    up = jnp.einsum('oh,bhwc,pw->bopc', mh, x_nhwc, mw)
    xin = jnp.concatenate([skip_nhwc, up], axis=-1)           # [B, H2, W2, Cin]
    xin_packed = xin.reshape(B * H2, W2 * cin)                # lane-dense [B*H2, W2*Cin]

    # Kernel-side parameter layouts.
    w1_k = _banded_conv_weights(w1_oihw, W2).astype(jnp.bfloat16)   # [3, W2*Cin,  W2*Cmid]
    w2_k = _banded_conv_weights(w2_oihw, W2).astype(jnp.bfloat16)   # [3, W2*Cmid, W2*Cout]
    g1_p = jnp.tile(g1, W2).reshape(1, W2 * cmid)
    b1_p = jnp.tile(b1, W2).reshape(1, W2 * cmid)
    g2_p = jnp.tile(g2, W2).reshape(1, W2 * cout)
    b2_p = jnp.tile(b2, W2).reshape(1, W2 * cout)

    # Time-embedding branch: one well-shaped XLA matmul, tiled to packed lanes.
    emb = (t * jax.nn.sigmoid(t)) @ lin_w.T + lin_b               # [B, Cout]
    emb_p = jnp.tile(emb, (1, W2)).reshape(B, 1, W2 * cout)       # [B, 1, W2*Cout]

    out = pl.pallas_call(
        _up_kernel,
        out_shape=jax.ShapeDtypeStruct((B * H2, W2 * cout), jnp.float32),
        grid=(B,),
        in_specs=[
            pl.BlockSpec((H2, W2 * cin), lambda b: (b, 0)),                 # xin (per sample)
            pl.BlockSpec((3, W2 * cin, W2 * cmid), lambda b: (0, 0, 0)),    # conv1 weights
            pl.BlockSpec((1, W2 * cmid), lambda b: (0, 0)),                 # gamma1
            pl.BlockSpec((1, W2 * cmid), lambda b: (0, 0)),                 # beta1
            pl.BlockSpec((3, W2 * cmid, W2 * cout), lambda b: (0, 0, 0)),   # conv2 weights
            pl.BlockSpec((1, W2 * cout), lambda b: (0, 0)),                 # gamma2
            pl.BlockSpec((1, W2 * cout), lambda b: (0, 0)),                 # beta2
            pl.BlockSpec((1, 1, W2 * cout), lambda b: (b, 0, 0)),           # time emb
        ],
        out_specs=pl.BlockSpec((H2, W2 * cout), lambda b: (b, 0)),
        compiler_params=pltpu.CompilerParams(
            dimension_semantics=("parallel",)),   # shards samples across v7x's 2 TCs
    )(xin_packed, w1_k, g1_p, b1_p, w2_k, g2_p, b2_p, emb_p)

    out_nhwc = out.reshape(B, H2, W2, cout)
    return jnp.transpose(out_nhwc, (0, 3, 1, 2))                  # back to NCHW


# ------------------------------ pure-JAX reference ----------------------------

def up_forward_ref(x, skip, t, w1_oihw, g1, b1, w2_oihw, g2, b2, lin_w, lin_b):
    B, _, H, W = x.shape
    mh = _bilinear_matrix(H, 2 * H)
    mw = _bilinear_matrix(W, 2 * W)
    up = jnp.einsum('oh,bchw,pw->bcop', mh, x, mw, precision=lax.Precision.HIGHEST)
    xc = jnp.concatenate([skip, up], axis=1)

    def conv(h, w):
        return lax.conv_general_dilated(
            h, w, (1, 1), ((1, 1), (1, 1)),
            dimension_numbers=('NCHW', 'OIHW', 'NCHW'),
            precision=lax.Precision.HIGHEST)

    def gn1(h, g, bt):
        m = jnp.mean(h, axis=(1, 2, 3), keepdims=True)
        v = jnp.mean((h - m) ** 2, axis=(1, 2, 3), keepdims=True)
        hn = (h - m) / jnp.sqrt(v + _GN_EPS)
        return hn * g[None, :, None, None] + bt[None, :, None, None]

    h = conv(xc, w1_oihw)
    h = gn1(h, g1, b1)
    h = 0.5 * h * (1.0 + jax.scipy.special.erf(h * _SQRT_HALF))   # exact GELU
    h = conv(h, w2_oihw)
    h = gn1(h, g2, b2)

    silu = t * jax.nn.sigmoid(t)
    emb = silu @ lin_w.T + lin_b
    return h + emb[:, :, None, None]


# ----------------------------------- main -------------------------------------

if __name__ == "__main__":
    key = jax.random.PRNGKey(0)
    B, Cx, H, W = 2, 4, 8, 8
    Cskip = 4
    in_channels = Cx + Cskip          # channels after concat = 8
    out_channels = 8
    mid_channels = in_channels // 2   # 4
    emb_dim = 32

    ks = jax.random.split(key, 11)
    x = jax.random.normal(ks[0], (B, Cx, H, W), jnp.float32)
    skip = jax.random.normal(ks[1], (B, Cskip, 2 * H, 2 * W), jnp.float32)
    t = jax.random.normal(ks[2], (B, emb_dim), jnp.float32)

    # deterministic synthetic parameters (module __init__ shapes)
    w1_oihw = 0.2 * jax.random.normal(ks[3], (mid_channels, in_channels, 3, 3), jnp.float32)
    g1 = 1.0 + 0.1 * jax.random.normal(ks[4], (mid_channels,), jnp.float32)
    b1 = 0.1 * jax.random.normal(ks[5], (mid_channels,), jnp.float32)
    w2_oihw = 0.2 * jax.random.normal(ks[6], (out_channels, mid_channels, 3, 3), jnp.float32)
    g2 = 1.0 + 0.1 * jax.random.normal(ks[7], (out_channels,), jnp.float32)
    b2 = 0.1 * jax.random.normal(ks[8], (out_channels,), jnp.float32)
    lin_w = 0.2 * jax.random.normal(ks[9], (out_channels, emb_dim), jnp.float32)
    lin_b = 0.1 * jax.random.normal(ks[10], (out_channels,), jnp.float32)

    out = up_forward_pallas(x, skip, t, w1_oihw, g1, b1, w2_oihw, g2, b2, lin_w, lin_b)
    out = jax.block_until_ready(out)

    ref = up_forward_ref(x, skip, t, w1_oihw, g1, b1, w2_oihw, g2, b2, lin_w, lin_b)
    assert out.shape == ref.shape == (B, out_channels, 2 * H, 2 * W)
    max_err = float(jnp.max(jnp.abs(out - ref)))
    # bf16 MXU operands, tanh-GELU and default-precision upsample vs. the
    # all-f32 exact-erf reference; 5e-2 comfortably bounds the combined error.
    if not jnp.allclose(out, ref, atol=5e-2, rtol=5e-2):
        raise AssertionError(f"Pallas output mismatch vs reference, max abs err = {max_err}")

    print("KERNEL_OK")
</pallas_src>

<mosaic_0001>
module attributes {stable_mosaic.version = 11 : i64} {
  func.func @_up_kernel(%arg0: i32, %arg1: memref<16x128xf32, #tpu.memory_space<vmem>>, %arg2: memref<3x128x64xbf16, #tpu.memory_space<vmem>>, %arg3: memref<1x64xf32, #tpu.memory_space<vmem>>, %arg4: memref<1x64xf32, #tpu.memory_space<vmem>>, %arg5: memref<3x64x128xbf16, #tpu.memory_space<vmem>>, %arg6: memref<1x128xf32, #tpu.memory_space<vmem>>, %arg7: memref<1x128xf32, #tpu.memory_space<vmem>>, %arg8: memref<1x1x128xf32, #tpu.memory_space<vmem>>, %arg9: memref<16x128xf32, #tpu.memory_space<vmem>>) attributes {dimension_semantics = [#tpu.dimension_semantics<parallel>], iteration_bounds = array<i64: 2>, scalar_prefetch = 0 : i64, scratch_operands = 0 : i64, tpu.core_type = #tpu.core_type<tc>, window_params = [{transform_indices = @transform_0, window_bounds = array<i64: 16, 128>}, {pipeline_mode = #tpu.pipeline_mode<synchronous>, transform_indices = @transform_1, window_bounds = array<i64: 3, 128, 64>}, {pipeline_mode = #tpu.pipeline_mode<synchronous>, transform_indices = @transform_2, window_bounds = array<i64: 1, 64>}, {pipeline_mode = #tpu.pipeline_mode<synchronous>, transform_indices = @transform_3, window_bounds = array<i64: 1, 64>}, {pipeline_mode = #tpu.pipeline_mode<synchronous>, transform_indices = @transform_4, window_bounds = array<i64: 3, 64, 128>}, {pipeline_mode = #tpu.pipeline_mode<synchronous>, transform_indices = @transform_5, window_bounds = array<i64: 1, 128>}, {pipeline_mode = #tpu.pipeline_mode<synchronous>, transform_indices = @transform_6, window_bounds = array<i64: 1, 128>}, {transform_indices = @transform_7, window_bounds = array<i64: 1, 1, 128>}, {transform_indices = @transform_8, window_bounds = array<i64: 16, 128>}]} {
    %0 = tpu.iota {dimensions = array<i32: 0>} : vector<16x1xi32>
    %c0_i32 = arith.constant 0 : i32
    %1 = vector.broadcast %c0_i32 : i32 to vector<16x1xi32>
    %2 = arith.cmpi sgt, %0, %1 : vector<16x1xi32>
    %c15_i32 = arith.constant 15 : i32
    %3 = vector.broadcast %c15_i32 : i32 to vector<16x1xi32>
    %4 = arith.cmpi slt, %0, %3 : vector<16x1xi32>
    %c0 = arith.constant 0 : index
    %c0_0 = arith.constant 0 : index
    %5 = vector.load %arg1[%c0, %c0_0] : memref<16x128xf32, #tpu.memory_space<vmem>>, vector<16x128xf32>
    %c1_i32 = arith.constant 1 : i32
    %6 = tpu.dynamic_rotate %5 by %c1_i32 dim 0 : vector<16x128xf32>, i32 -> vector<16x128xf32>
    %cst = arith.constant 0.000000e+00 : f32
    %7 = vector.shape_cast %2 : vector<16x1xi1> to vector<16x1xi1>
    %8 = vector.broadcast %7 : vector<16x1xi1> to vector<16x128xi1>
    %9 = vector.broadcast %cst : f32 to vector<16x128xf32>
    %10 = arith.select %8, %6, %9 : vector<16x128xi1>, vector<16x128xf32>
    %c15_i32_1 = arith.constant 15 : i32
    %11 = tpu.dynamic_rotate %5 by %c15_i32_1 dim 0 : vector<16x128xf32>, i32 -> vector<16x128xf32>
    %cst_2 = arith.constant 0.000000e+00 : f32
    %12 = vector.shape_cast %4 : vector<16x1xi1> to vector<16x1xi1>
    %13 = vector.broadcast %12 : vector<16x1xi1> to vector<16x128xi1>
    %14 = vector.broadcast %cst_2 : f32 to vector<16x128xf32>
    %15 = arith.select %13, %11, %14 : vector<16x128xi1>, vector<16x128xf32>
    %16 = arith.truncf %10 : vector<16x128xf32> to vector<16x128xbf16>
    %c0_3 = arith.constant 0 : index
    %c0_4 = arith.constant 0 : index
    %c0_5 = arith.constant 0 : index
    %17 = vector.load %arg2[%c0_3, %c0_4, %c0_5] : memref<3x128x64xbf16, #tpu.memory_space<vmem>>, vector<1x128x64xbf16>
    %18 = vector.shape_cast %17 : vector<1x128x64xbf16> to vector<128x64xbf16>
    %cst_6 = arith.constant dense<0.000000e+00> : vector<16x64xf32>
    %19 = tpu.matmul %16, %18, %cst_6 {dimension_numbers = #tpu.dot_dimension_numbers<[1], [0], [0], [1], [0, 0, 1, 1], [], []>} : vector<16x128xbf16>, vector<128x64xbf16>, vector<16x64xf32> -> vector<16x64xf32>
    %20 = arith.truncf %5 : vector<16x128xf32> to vector<16x128xbf16>
    %c1 = arith.constant 1 : index
    %c0_7 = arith.constant 0 : index
    %c0_8 = arith.constant 0 : index
    %21 = vector.load %arg2[%c1, %c0_7, %c0_8] : memref<3x128x64xbf16, #tpu.memory_space<vmem>>, vector<1x128x64xbf16>
    %22 = vector.shape_cast %21 : vector<1x128x64xbf16> to vector<128x64xbf16>
    %cst_9 = arith.constant dense<0.000000e+00> : vector<16x64xf32>
    %23 = tpu.matmul %20, %22, %cst_9 {dimension_numbers = #tpu.dot_dimension_numbers<[1], [0], [0], [1], [0, 0, 1, 1], [], []>} : vector<16x128xbf16>, vector<128x64xbf16>, vector<16x64xf32> -> vector<16x64xf32>
    %24 = arith.addf %19, %23 : vector<16x64xf32>
    %25 = arith.truncf %15 : vector<16x128xf32> to vector<16x128xbf16>
    %c2 = arith.constant 2 : index
    %c0_10 = arith.constant 0 : index
    %c0_11 = arith.constant 0 : index
    %26 = vector.load %arg2[%c2, %c0_10, %c0_11] : memref<3x128x64xbf16, #tpu.memory_space<vmem>>, vector<1x128x64xbf16>
    %27 = vector.shape_cast %26 : vector<1x128x64xbf16> to vector<128x64xbf16>
    %cst_12 = arith.constant dense<0.000000e+00> : vector<16x64xf32>
    %28 = tpu.matmul %25, %27, %cst_12 {dimension_numbers = #tpu.dot_dimension_numbers<[1], [0], [0], [1], [0, 0, 1, 1], [], []>} : vector<16x128xbf16>, vector<128x64xbf16>, vector<16x64xf32> -> vector<16x64xf32>
    %29 = arith.addf %24, %28 : vector<16x64xf32>
    %30 = vector.shape_cast %29 : vector<16x64xf32> to vector<1x16x64xf32>
    %cst_13 = arith.constant dense<0.000000e+00> : vector<1xf32>
    %31 = vector.multi_reduction <add>, %30, %cst_13 [1, 2] : vector<1x16x64xf32> to vector<1xf32>
    %32 = vector.shape_cast %31 : vector<1xf32> to vector<1x1x1xf32>
    %33 = vector.extract %32[0, 0, 0] : f32 from vector<1x1x1xf32>
    %34 = vector.broadcast %33 : f32 to vector<1x1xf32>
    %35 = arith.mulf %29, %29 : vector<16x64xf32>
    %36 = vector.shape_cast %35 : vector<16x64xf32> to vector<1x16x64xf32>
    %cst_14 = arith.constant dense<0.000000e+00> : vector<1xf32>
    %37 = vector.multi_reduction <add>, %36, %cst_14 [1, 2] : vector<1x16x64xf32> to vector<1xf32>
    %38 = vector.shape_cast %37 : vector<1xf32> to vector<1x1x1xf32>
    %39 = vector.extract %38[0, 0, 0] : f32 from vector<1x1x1xf32>
    %40 = vector.broadcast %39 : f32 to vector<1x1xf32>
    %cst_15 = arith.constant 9.765625E-4 : f32
    %41 = vector.broadcast %cst_15 : f32 to vector<1x1xf32>
    %42 = arith.mulf %34, %41 : vector<1x1xf32>
    %cst_16 = arith.constant 9.765625E-4 : f32
    %43 = vector.broadcast %cst_16 : f32 to vector<1x1xf32>
    %44 = arith.mulf %40, %43 : vector<1x1xf32>
    %45 = arith.mulf %42, %42 : vector<1x1xf32>
    %46 = arith.subf %44, %45 : vector<1x1xf32>
    %cst_17 = arith.constant 9.99999974E-6 : f32
    %47 = vector.broadcast %cst_17 : f32 to vector<1x1xf32>
    %48 = arith.addf %46, %47 : vector<1x1xf32>
    %49 = math.rsqrt %48 : vector<1x1xf32>
    %c0_18 = arith.constant 0 : index
    %c0_19 = arith.constant 0 : index
    %50 = vector.load %arg3[%c0_18, %c0_19] : memref<1x64xf32, #tpu.memory_space<vmem>>, vector<1x64xf32>
    %51 = vector.broadcast %49 : vector<1x1xf32> to vector<1x64xf32>
    %52 = arith.mulf %50, %51 : vector<1x64xf32>
    %c0_20 = arith.constant 0 : index
    %c0_21 = arith.constant 0 : index
    %53 = vector.load %arg4[%c0_20, %c0_21] : memref<1x64xf32, #tpu.memory_space<vmem>>, vector<1x64xf32>
    %54 = vector.broadcast %42 : vector<1x1xf32> to vector<1x64xf32>
    %55 = arith.mulf %54, %52 : vector<1x64xf32>
    %56 = arith.subf %53, %55 : vector<1x64xf32>
    %57 = vector.broadcast %52 : vector<1x64xf32> to vector<16x64xf32>
    %58 = arith.mulf %29, %57 : vector<16x64xf32>
    %59 = vector.broadcast %56 : vector<1x64xf32> to vector<16x64xf32>
    %60 = arith.addf %58, %59 : vector<16x64xf32>
    %cst_22 = arith.constant 5.000000e-01 : f32
    %61 = vector.broadcast %cst_22 : f32 to vector<16x64xf32>
    %62 = arith.mulf %61, %60 : vector<16x64xf32>
    %cst_23 = arith.constant 4.471500e-02 : f32
    %63 = vector.broadcast %cst_23 : f32 to vector<16x64xf32>
    %64 = arith.mulf %63, %60 : vector<16x64xf32>
    %65 = arith.mulf %64, %60 : vector<16x64xf32>
    %66 = arith.mulf %65, %60 : vector<16x64xf32>
    %67 = arith.addf %60, %66 : vector<16x64xf32>
    %cst_24 = arith.constant 0.797884583 : f32
    %68 = vector.broadcast %cst_24 : f32 to vector<16x64xf32>
    %69 = arith.mulf %68, %67 : vector<16x64xf32>
    %70 = math.tanh %69 : vector<16x64xf32>
    %cst_25 = arith.constant 1.000000e+00 : f32
    %71 = vector.broadcast %cst_25 : f32 to vector<16x64xf32>
    %72 = arith.addf %71, %70 : vector<16x64xf32>
    %73 = arith.mulf %62, %72 : vector<16x64xf32>
    %c1_i32_26 = arith.constant 1 : i32
    %74 = tpu.dynamic_rotate %73 by %c1_i32_26 dim 0 : vector<16x64xf32>, i32 -> vector<16x64xf32>
    %cst_27 = arith.constant 0.000000e+00 : f32
    %75 = vector.shape_cast %2 : vector<16x1xi1> to vector<16x1xi1>
    %76 = vector.broadcast %75 : vector<16x1xi1> to vector<16x64xi1>
    %77 = vector.broadcast %cst_27 : f32 to vector<16x64xf32>
    %78 = arith.select %76, %74, %77 : vector<16x64xi1>, vector<16x64xf32>
    %c15_i32_28 = arith.constant 15 : i32
    %79 = tpu.dynamic_rotate %73 by %c15_i32_28 dim 0 : vector<16x64xf32>, i32 -> vector<16x64xf32>
    %cst_29 = arith.constant 0.000000e+00 : f32
    %80 = vector.shape_cast %4 : vector<16x1xi1> to vector<16x1xi1>
    %81 = vector.broadcast %80 : vector<16x1xi1> to vector<16x64xi1>
    %82 = vector.broadcast %cst_29 : f32 to vector<16x64xf32>
    %83 = arith.select %81, %79, %82 : vector<16x64xi1>, vector<16x64xf32>
    %84 = arith.truncf %78 : vector<16x64xf32> to vector<16x64xbf16>
    %c0_30 = arith.constant 0 : index
    %c0_31 = arith.constant 0 : index
    %c0_32 = arith.constant 0 : index
    %85 = vector.load %arg5[%c0_30, %c0_31, %c0_32] : memref<3x64x128xbf16, #tpu.memory_space<vmem>>, vector<1x64x128xbf16>
    %86 = vector.shape_cast %85 : vector<1x64x128xbf16> to vector<64x128xbf16>
    %cst_33 = arith.constant dense<0.000000e+00> : vector<16x128xf32>
    %87 = tpu.matmul %84, %86, %cst_33 {dimension_numbers = #tpu.dot_dimension_numbers<[1], [0], [0], [1], [0, 0, 1, 1], [], []>} : vector<16x64xbf16>, vector<64x128xbf16>, vector<16x128xf32> -> vector<16x128xf32>
    %88 = arith.truncf %73 : vector<16x64xf32> to vector<16x64xbf16>
    %c1_34 = arith.constant 1 : index
    %c0_35 = arith.constant 0 : index
    %c0_36 = arith.constant 0 : index
    %89 = vector.load %arg5[%c1_34, %c0_35, %c0_36] : memref<3x64x128xbf16, #tpu.memory_space<vmem>>, vector<1x64x128xbf16>
    %90 = vector.shape_cast %89 : vector<1x64x128xbf16> to vector<64x128xbf16>
    %cst_37 = arith.constant dense<0.000000e+00> : vector<16x128xf32>
    %91 = tpu.matmul %88, %90, %cst_37 {dimension_numbers = #tpu.dot_dimension_numbers<[1], [0], [0], [1], [0, 0, 1, 1], [], []>} : vector<16x64xbf16>, vector<64x128xbf16>, vector<16x128xf32> -> vector<16x128xf32>
    %92 = arith.addf %87, %91 : vector<16x128xf32>
    %93 = arith.truncf %83 : vector<16x64xf32> to vector<16x64xbf16>
    %c2_38 = arith.constant 2 : index
    %c0_39 = arith.constant 0 : index
    %c0_40 = arith.constant 0 : index
    %94 = vector.load %arg5[%c2_38, %c0_39, %c0_40] : memref<3x64x128xbf16, #tpu.memory_space<vmem>>, vector<1x64x128xbf16>
    %95 = vector.shape_cast %94 : vector<1x64x128xbf16> to vector<64x128xbf16>
    %cst_41 = arith.constant dense<0.000000e+00> : vector<16x128xf32>
    %96 = tpu.matmul %93, %95, %cst_41 {dimension_numbers = #tpu.dot_dimension_numbers<[1], [0], [0], [1], [0, 0, 1, 1], [], []>} : vector<16x64xbf16>, vector<64x128xbf16>, vector<16x128xf32> -> vector<16x128xf32>
    %97 = arith.addf %92, %96 : vector<16x128xf32>
    %98 = vector.shape_cast %97 : vector<16x128xf32> to vector<1x16x128xf32>
    %cst_42 = arith.constant dense<0.000000e+00> : vector<1xf32>
    %99 = vector.multi_reduction <add>, %98, %cst_42 [1, 2] : vector<1x16x128xf32> to vector<1xf32>
    %100 = vector.shape_cast %99 : vector<1xf32> to vector<1x1x1xf32>
    %101 = vector.extract %100[0, 0, 0] : f32 from vector<1x1x1xf32>
    %102 = vector.broadcast %101 : f32 to vector<1x1xf32>
    %103 = arith.mulf %97, %97 : vector<16x128xf32>
    %104 = vector.shape_cast %103 : vector<16x128xf32> to vector<1x16x128xf32>
    %cst_43 = arith.constant dense<0.000000e+00> : vector<1xf32>
    %105 = vector.multi_reduction <add>, %104, %cst_43 [1, 2] : vector<1x16x128xf32> to vector<1xf32>
    %106 = vector.shape_cast %105 : vector<1xf32> to vector<1x1x1xf32>
    %107 = vector.extract %106[0, 0, 0] : f32 from vector<1x1x1xf32>
    %108 = vector.broadcast %107 : f32 to vector<1x1xf32>
    %cst_44 = arith.constant 4.8828125E-4 : f32
    %109 = vector.broadcast %cst_44 : f32 to vector<1x1xf32>
    %110 = arith.mulf %102, %109 : vector<1x1xf32>
    %cst_45 = arith.constant 4.8828125E-4 : f32
    %111 = vector.broadcast %cst_45 : f32 to vector<1x1xf32>
    %112 = arith.mulf %108, %111 : vector<1x1xf32>
    %113 = arith.mulf %110, %110 : vector<1x1xf32>
    %114 = arith.subf %112, %113 : vector<1x1xf32>
    %cst_46 = arith.constant 9.99999974E-6 : f32
    %115 = vector.broadcast %cst_46 : f32 to vector<1x1xf32>
    %116 = arith.addf %114, %115 : vector<1x1xf32>
    %117 = math.rsqrt %116 : vector<1x1xf32>
    %c0_47 = arith.constant 0 : index
    %c0_48 = arith.constant 0 : index
    %118 = vector.load %arg6[%c0_47, %c0_48] : memref<1x128xf32, #tpu.memory_space<vmem>>, vector<1x128xf32>
    %119 = vector.broadcast %117 : vector<1x1xf32> to vector<1x128xf32>
    %120 = arith.mulf %118, %119 : vector<1x128xf32>
    %c0_49 = arith.constant 0 : index
    %c0_50 = arith.constant 0 : index
    %121 = vector.load %arg7[%c0_49, %c0_50] : memref<1x128xf32, #tpu.memory_space<vmem>>, vector<1x128xf32>
    %122 = vector.broadcast %110 : vector<1x1xf32> to vector<1x128xf32>
    %123 = arith.mulf %122, %120 : vector<1x128xf32>
    %124 = arith.subf %121, %123 : vector<1x128xf32>
    %125 = vector.broadcast %120 : vector<1x128xf32> to vector<16x128xf32>
    %126 = arith.mulf %97, %125 : vector<16x128xf32>
    %127 = vector.broadcast %124 : vector<1x128xf32> to vector<16x128xf32>
    %128 = arith.addf %126, %127 : vector<16x128xf32>
    %c0_51 = arith.constant 0 : index
    %c0_52 = arith.constant 0 : index
    %c0_53 = arith.constant 0 : index
    %129 = vector.load %arg8[%c0_51, %c0_52, %c0_53] : memref<1x1x128xf32, #tpu.memory_space<vmem>>, vector<1x1x128xf32>
    %130 = vector.shape_cast %129 : vector<1x1x128xf32> to vector<1x128xf32>
    %131 = vector.broadcast %130 : vector<1x128xf32> to vector<16x128xf32>
    %132 = arith.addf %128, %131 : vector<16x128xf32>
    %c0_54 = arith.constant 0 : index
    %c0_55 = arith.constant 0 : index
    %133 = vector.load %arg9[%c0_54, %c0_55] : memref<16x128xf32, #tpu.memory_space<vmem>>, vector<16x128xf32>
    tpu.vector_store %arg9[%c0_54, %c0_55], %132 {strides = array<i32>} : memref<16x128xf32, #tpu.memory_space<vmem>>, vector<16x128xf32>,
    return
  }
  func.func @transform_0(%arg0: i32) -> (i32, i32) {
    %c0_i32 = arith.constant 0 : i32
    %c0_i32_0 = arith.constant 0 : i32
    return %arg0, %c0_i32 : i32, i32
  }
  func.func @transform_1(%arg0: i32) -> (i32, i32, i32) {
    %c0_i32 = arith.constant 0 : i32
    %c0_i32_0 = arith.constant 0 : i32
    %c0_i32_1 = arith.constant 0 : i32
    %c0_i32_2 = arith.constant 0 : i32
    return %c0_i32, %c0_i32_0, %c0_i32_1 : i32, i32, i32
  }
  func.func @transform_2(%arg0: i32) -> (i32, i32) {
    %c0_i32 = arith.constant 0 : i32
    %c0_i32_0 = arith.constant 0 : i32
    %c0_i32_1 = arith.constant 0 : i32
    return %c0_i32, %c0_i32_0 : i32, i32
  }
  func.func @transform_3(%arg0: i32) -> (i32, i32) {
    %c0_i32 = arith.constant 0 : i32
    %c0_i32_0 = arith.constant 0 : i32
    %c0_i32_1 = arith.constant 0 : i32
    return %c0_i32, %c0_i32_0 : i32, i32
  }
  func.func @transform_4(%arg0: i32) -> (i32, i32, i32) {
    %c0_i32 = arith.constant 0 : i32
    %c0_i32_0 = arith.constant 0 : i32
    %c0_i32_1 = arith.constant 0 : i32
    %c0_i32_2 = arith.constant 0 : i32
    return %c0_i32, %c0_i32_0, %c0_i32_1 : i32, i32, i32
  }
  func.func @transform_5(%arg0: i32) -> (i32, i32) {
    %c0_i32 = arith.constant 0 : i32
    %c0_i32_0 = arith.constant 0 : i32
    %c0_i32_1 = arith.constant 0 : i32
    return %c0_i32, %c0_i32_0 : i32, i32
  }
  func.func @transform_6(%arg0: i32) -> (i32, i32) {
    %c0_i32 = arith.constant 0 : i32
    %c0_i32_0 = arith.constant 0 : i32
    %c0_i32_1 = arith.constant 0 : i32
    return %c0_i32, %c0_i32_0 : i32, i32
  }
  func.func @transform_7(%arg0: i32) -> (i32, i32, i32) {
    %c0_i32 = arith.constant 0 : i32
    %c0_i32_0 = arith.constant 0 : i32
    %c0_i32_1 = arith.constant 0 : i32
    return %arg0, %c0_i32, %c0_i32_0 : i32, i32, i32
  }
  func.func @transform_8(%arg0: i32) -> (i32, i32) {
    %c0_i32 = arith.constant 0 : i32
    %c0_i32_0 = arith.constant 0 : i32
    return %arg0, %c0_i32 : i32, i32
  }
}

</mosaic_0001>

<bundles_post_ra>
// kernel: tpu_custom_call.1
= control target key start
LH: loop header
LB: loop body
LE: loop exit
PB: predicated region body
PF: predicated region fallthrough
CT: control target
= control target key end

     0   :  { %13 = vsyncpa [#allocation3], 0  ;;  %s1947_s0 = inlined_call_operand.vmem [shape: f32[32,128], index: 0, kind: input, shape index: {}]   ;;  %s1948_s1 = inlined_call_operand.vmem [shape: bf16[3,128,64], index: 1, kind: input, shape index: {}]   ;;  %s1949_s2 = inlined_call_operand.vmem [shape: f32[1,64], index: 2, kind: input, shape index: {}]   ;;  %s1950_s3 = inlined_call_operand.vmem [shape: f32[1,64], index: 3, kind: input, shape index: {}]   ;;  %s1951_s4 = inlined_call_operand.vmem [shape: bf16[3,64,128], index: 4, kind: input, shape index: {}]   ;;  %s1952_s5 = inlined_call_operand.vmem [shape: f32[1,128], index: 5, kind: input, shape index: {}]   ;;  %s1953_s6 = inlined_call_operand.vmem [shape: f32[1,128], index: 6, kind: input, shape index: {}]   ;;  %s1954_s7 = inlined_call_operand.vmem [shape: f32[2,1,128], index: 7, kind: input, shape index: {}]   ;;  %s1955_s8 = inlined_call_operand.hbm [shape: f32[32,128], index: 8, kind: output, shape index: {}]  }
   0x1   :  { %15 = vsyncpa [#allocation3 + $0x1], 0  ;;  %s1613_s27 = smov 0   ;;  %s1615_s28 = smov 0  }
   0x2   :  { %s1617_s29 = smov 0   ;;  %s1619_s30 = smov 0  }
   0x3 LB: > { %s1634_s9 = sadd.s32 4294967295, %s1560_s30   ;;  %s1143_s10 = sadd.s32 4294967294, %s1560_s30   ;;  %s1560_s30 = sphi %s1619_s30, %s1961_s30   ;;  %s1556_s29 = sphi %s1617_s29, %s1960_s29   ;;  %s1552_s28 = sphi %s1615_s28, %s1959_s28   ;;  %s1548_s27 = sphi %s1613_s27, %s1958_s27  }
   0x4   : > { %s1638_s11 = sadd.s32 1, %s1560_s30   ;;  %s206_s12 = sadd.s32 1, %s1556_s29 }
   0x5   : > { %s203_s13 = ssub.s32 %s1560_s30, %s1638_s11  ;;  %p216_p0 = scmp.ne.s32.totalorder %s1556_s29, %s1552_s28 }
   0x6   : > { %p204_p1 = scmp.eq.s32.totalorder %s203_s13, 0  ;;  %p217_p2 = scmp.eq.s32.totalorder %s1634_s9, 1 }
   0x7   : > { %p222_p3 = scmp.ne.s32.totalorder %s1552_s28, %s1548_s27  ;;  %p223_p4 = scmp.eq.s32.totalorder %s1143_s10, 1 }
   0x8   : > { %s1649_s14 = scalar_select %p204_p1, %s1556_s29, %s206_s12  }
   0x9   : > { %p1651_p5 = por %p217_p2, %p216_p0  ;;  %p1655_p6 = por %p223_p4, %p222_p3 }
   0xa   : > { %p1146_p7 = scmp.ge.s32.totalorder %s1560_s30, 1  ;;  %p274_p8 = scmp.lt.s32.totalorder %s1560_s30, 3 }
   0xc   : > { %p275_p9 = pnand %p1146_p7, %p274_p8 }
   0xd   : > { %v1454_v0 = vld [vmem:[%s1948_s1] sm:$0xff] (!%p275_p9)   ;;  %v1562_v1 = vmov (!%p275_p9), 0.0   ;;  %v1455_v2 = vld [vmem:[%s1948_s1 + $0x8] sm:$0xff] (!%p275_p9)   ;;  %vm1563_vm0 = vmmov (!%p275_p9), 0   ;;  %s1148_s21 = sshll.u32 (!%p275_p9), %s1634_s9, 1  ;;  %v1456_v3 = vld [vmem:[%s1948_s1 + $0x10] sm:$0xff] (!%p275_p9)   ;;  %v322_v8 = vlaneseq (!%p275_p9) }
   0xe   : > { %278 = sbr.rel (%p275_p9) target bundleno = 1062 (0x426), region = 52  ;;  %1312 = vmatprep.subr.bf16.mxu0 (!%p275_p9), %v1562_v1  ;;  %1292 = vmatprep.subr.bf16.mxu1 (!%p275_p9), %v1562_v1  ;;  %p312_p10 = scmp.lt.s32.totalorder (!%p275_p9), %s1148_s21, 3  ;;  %v1462_v4 = vld [vmem:[%s1948_s1 + $0x40] sm:$0xff] (!%p275_p9)   ;;  %v1457_v5 = vld [vmem:[%s1948_s1 + $0x18] sm:$0xff] (!%p275_p9)   ;;  %v1464_v6 = vld [vmem:[%s1948_s1 + $0x48] sm:$0xff] (!%p275_p9)   ;;  %vm1564_vm3 = vmmov (!%p275_p9), 1  }
   0xf   : > { %1313 = vmatpush3.bf16.msra.mxu0 (!%p275_p9), %v1454_v0  ;;  %1328 = vmatprep.mubr.msk.bf16.mxu0 (!%p275_p9), %vm1563_vm0, %v1562_v1  ;;  %v1458_v7 = vld [vmem:[%s1948_s1 + $0x20] sm:$0xff] (!%p275_p9)   ;;  %v1466_v9 = vld [vmem:[%s1948_s1 + $0x50] sm:$0xff] (!%p275_p9)   ;;  %v1459_v10 = vld [vmem:[%s1948_s1 + $0x28] sm:$0xff] (!%p275_p9)   ;;  %v1706_v12 = vshrl.u32 (!%p275_p9), %v322_v8, 7  ;;  %vm675_vm8 = vcmask (!%p275_p9), 523264   ;;  %s308_s25 = sand.u32 (!%p275_p9), 1, %s1552_s28  }
  0x10   : > { %1314 = vmatprep.subr.bf16.mxu0 (!%p275_p9), %v1562_v1  ;;  %1308 = vmatprep.mubr.msk.bf16.mxu1 (!%p275_p9), %vm1563_vm0, %v1562_v1  ;;  %v1468_v13 = vld [vmem:[%s1948_s1 + $0x58] sm:$0xff] (!%p275_p9)   ;;  %v1460_v15 = vld [vmem:[%s1948_s1 + $0x30] sm:$0xff] (!%p275_p9)   ;;  %v1470_v18 = vld [vmem:[%s1948_s1 + $0x60] sm:$0xff] (!%p275_p9)   ;;  %p317_p11 = scmp.lt.s32.totalorder (!%p275_p9), %s1634_s9, 1  ;;  %s1249_s22 = sshll.u32 (!%p275_p9), %s1634_s9, 8 }
  0x11   : > { %1293 = vmatpush3.bf16.msra.mxu1 (!%p275_p9), %v1462_v4  ;;  %vm325_vm1 = vcmp.gt.s32.totalorder (!%p275_p9), %v1706_v12, 0  ;;  %vm333_vm2 = vcmp.lt.s32.totalorder (!%p275_p9), %v1706_v12, 1  ;;  %v1461_v19 = vld [vmem:[%s1948_s1 + $0x38] sm:$0xff] (!%p275_p9)   ;;  %v1472_v20 = vld [vmem:[%s1948_s1 + $0x68] sm:$0xff] (!%p275_p9)   ;;  %v1463_v23 = vld [vmem:[%s1948_s1 + $0x80] sm:$0xff] (!%p275_p9)   ;;  %v1787_v36 = vadd.s32 (!%p275_p9), 8, %v1706_v12  ;;  %s1902_s13 = scalar_lea.hbm (!%p275_p9), %s1955_s8, %s1249_s22 }
  0x12   : > { %1294 = vmatprep.subr.bf16.mxu1 (!%p275_p9), %v1562_v1  ;;  %vm1182_vm4 = vmpackc.low (!%p275_p9), %vm1564_vm3, %vm325_vm1  ;;  %v1474_v24 = vld [vmem:[%s1948_s1 + $0x70] sm:$0xff] (!%p275_p9)   ;;  %v1465_v26 = vld [vmem:[%s1948_s1 + $0x88] sm:$0xff] (!%p275_p9)   ;;  %vm344_vm5 = vcmp.lt.s32.totalorder (!%p275_p9), %v1706_v12, 7 }
  0x13   : > { %1315 = vmatpush3.bf16.msra.mxu0 (!%p275_p9), %v1455_v2  ;;  %v1476_v27 = vld [vmem:[%s1948_s1 + $0x78] sm:$0xff] (!%p275_p9)   ;;  %v1467_v29 = vld [vmem:[%s1948_s1 + $0x90] sm:$0xff] (!%p275_p9)   ;;  %v1471_v31 = vld [vmem:[%s1948_s1 + $0xa0] sm:$0xff] (!%p275_p9)   ;;  %vm328_vm6 = vcmp.lt.s32.totalorder (!%p275_p9), %v1787_v36, 15 }
  0x14   : > { %1316 = vmatprep.subr.bf16.mxu0 (!%p275_p9), %v1562_v1  ;;  %v1469_v30 = vld [vmem:[%s1948_s1 + $0x98] sm:$0xff] (!%p275_p9)   ;;  %v1473_v32 = vld [vmem:[%s1948_s1 + $0xa8] sm:$0xff] (!%p275_p9)   ;;  %v1475_v33 = vld [vmem:[%s1948_s1 + $0xb0] sm:$0xff] (!%p275_p9)  }
  0x15   : > { %s1963_s21 = smov (!%p312_p10, %s1148_s21), 3  ;;  %1295 = vmatpush3.bf16.msra.mxu1 %v1464_v6  ;;  %v1477_v37 = vld [vmem:[%s1948_s1 + $0xb8] sm:$0xff]   ;;  %vm1209_vm7 = vmpackc.low %vm328_vm6, %vm1564_vm3  ;;  %v1478_v59 = vld [vmem:[%s1951_s4 + $0x20] sm:$0xff]  }
  0x16   : > { %s1149_s12 = sshll.u32 %s1963_s21, 3  ;;  %1296 = vmatprep.subr.bf16.mxu1 %v1562_v1  ;;  %v1479_v60 = vld [vmem:[%s1951_s4 + $0x28] sm:$0xff]   ;;  %v1480_v61 = vld [vmem:[%s1951_s4 + $0x30] sm:$0xff]   ;;  %v1481_v62 = vld [vmem:[%s1951_s4 + $0x38] sm:$0xff]  }
  0x17   : > { %1317 = vmatpush3.bf16.msra.mxu0 %v1456_v3  ;;  %s315_s23 = scalar_lea.vmem %s1947_s0, %s1149_s12 }
  0x18   : > { %1318 = vmatprep.subr.bf16.mxu0 %v1562_v1  ;;  %v1704_v11 = vld [vmem:[%s315_s23] sm:$0xff]  ;;  %v1712_v14 = vld [vmem:[%s315_s23 + $0x8] sm:$0xff]  ;;  %s318_s12 = scalar_select %p317_p11, %s1634_s9, 1 }
  0x19   : > { %1297 = vmatpush3.bf16.msra.mxu1 %v1466_v9  ;;  %v331_v16 = vrot.slane %v1704_v11, 7  ;;  %v332_v17 = vrot.slane %v1712_v14, 7  ;;  %v370_v28 = vpack.c.bf16 %v1712_v14, %v1704_v11  ;;  %v342_v34 = vrot.slane %v1704_v11, 1  ;;  %s1906_s9 = scalar_lea.sflag [#allocation3], %s308_s25 }
  0x1a   : > { %1298 = vmatprep.subr.bf16.mxu1 %v1562_v1  ;;  %v343_v35 = vrot.slane %v1712_v14, 1  ;;  %s319_s20 = scalar_lea.vmem %s1954_s7, %s318_s12  ;;  %s1565_s12 = smov [#allocation2]  }
  0x1b   : > { %1319 = vmatpush3.bf16.msra.mxu0 %v1457_v5  ;;  %v334_v21 = vsel %vm333_vm2, %v331_v16, %v332_v17  ;;  %v335_v22 = vsel %vm333_vm2, %v332_v17, %v331_v16  ;;  %s1502_s17 = sshll.u32 %s1565_s12, 4  ;;  %s1503_s17 = int_to_ptr.vmem [resolvable:$false] %s1502_s17 }
  0x1c   : > { %1320 = vmatprep.subr.bf16.mxu0 %v1562_v1  ;;  %v1183_v25 = vpack.c.bf16 %v334_v21, %v335_v22  ;;  %v345_v38 = vsel %vm344_vm5, %v342_v34, %v343_v35  ;;  %v346_v39 = vsel %vm344_vm5, %v343_v35, %v342_v34  ;;  %v710_v22 = vld [vmem:[%s1949_s2] sm:$0x1]  ;;  %s1504_s18 = scalar_lea.vmem %s1503_s17, 512 }
  0x1d   : > { %1299 = vmatpush3.bf16.msra.mxu1 %v1468_v13  ;;  %v1210_v40 = vpack.c.bf16 %v346_v39, %v345_v38 }
  0x1e   : > { %1300 = vmatprep.subr.bf16.mxu1 %v1562_v1 }
  0x1f   : > { %1321 = vmatpush3.bf16.msra.mxu0 %v1458_v7 }
  0x20   : > { %1322 = vmatprep.subr.bf16.mxu0 %v1562_v1 }
  0x21   : > { %1301 = vmatpush3.bf16.msra.mxu1 %v1470_v18 }
  0x22   : > { %1302 = vmatprep.subr.bf16.mxu1 %v1562_v1 }
  0x23   : > { %1323 = vmatpush3.bf16.msra.mxu0 %v1459_v10 }
  0x24   : > { %1324 = vmatprep.subr.bf16.mxu0 %v1562_v1 }
  0x25   : > { %1303 = vmatpush3.bf16.msra.mxu1 %v1472_v20 }
  0x26   : > { %1304 = vmatprep.subr.bf16.mxu1 %v1562_v1 }
  0x27   : > { %1325 = vmatpush3.bf16.msra.mxu0 %v1460_v15 }
  0x28   : > { %1326 = vmatprep.subr.bf16.mxu0 %v1562_v1 }
  0x29   : > { %1305 = vmatpush3.bf16.msra.mxu1 %v1474_v24 }
  0x2a   : > { %1306 = vmatprep.subr.bf16.mxu1 %v1562_v1 }
  0x2b   : > { %1327 = vmatpush3.bf16.msra.mxu0 %v1461_v19 }
  0x2c   : > { %1332 = vmatprep.subr.bf16.mxu0 %v1562_v1 }
  0x2d   : > { %1307 = vmatpush3.bf16.msra.mxu1 %v1476_v27 }
  0x2e   : > { %1329 = vmatmul.mubr.msk.bf16.vlgmr.msra.gmra.mrb[0].mxu0 %vm1182_vm4, %v1183_v25  ;;  %1352 = vmatprep.subr.bf16.mxu1 %v1562_v1 }
  0x2f   : > { %1333 = vmatpush3.bf16.msra.mxu0 %v1463_v23  ;;  %1348 = vmatprep.mubr.msk.bf16.mxu0 %vm1563_vm0, %v1562_v1  ;;  %v1827_v23 = vsub.s32 0, %v1706_v12 }
  0x30   : > { %1334 = vmatprep.subr.bf16.mxu0 %v1562_v1  ;;  %1309 = vmatmul.mubr.bf16.vlgmr.msra.gmra.mrb[0].mxu1 %v370_v28 }
  0x31   : > { %1360 = vmatprep.mubr.msk.bf16.mxu1 %vm1563_vm0, %v1562_v1  ;;  %1353 = vmatpush3.bf16.msra.mxu1 %v1478_v59  ;;  %v1484_v59 = vld [vmem:[%s1951_s4 + $0x10] sm:$0xff]  }
  0x32   : > { %1354 = vmatprep.subr.bf16.mxu1 %v1562_v1 }
  0x33   : > { %1335 = vmatpush3.bf16.msra.mxu0 %v1465_v26  ;;  %v712_v26 = vld [vmem:[%s1950_s3] sm:$0x1] }
  0x34   : > { %1336 = vmatprep.subr.bf16.mxu0 %v1562_v1 }
  0x35   : > { %1355 = vmatpush3.bf16.msra.mxu1 %v1479_v60 }
  0x36   : > { %1356 = vmatprep.subr.bf16.mxu1 %v1562_v1 }
  0x37   : > { %1337 = vmatpush3.bf16.msra.mxu0 %v1467_v29 }
  0x38   : > { %1338 = vmatprep.subr.bf16.mxu0 %v1562_v1 }
  0x39   : > { %1357 = vmatpush3.bf16.msra.mxu1 %v1480_v61  ;;  %v1485_v61 = vld [vmem:[%s1951_s4 + $0x18] sm:$0xff]  }
  0x3a   : > { %1358 = vmatprep.subr.bf16.mxu1 %v1562_v1 }
  0x3b   : > { %1339 = vmatpush3.bf16.msra.mxu0 %v1469_v30 }
  0x3c   : > { %1340 = vmatprep.subr.bf16.mxu0 %v1562_v1 }
  0x3d   : > { %1359 = vmatpush3.bf16.msra.mxu1 %v1481_v62 }
  0x3e   : > { %1364 = vmatprep.subr.bf16.mxu1 %v1562_v1 }
  0x3f   : > { %1341 = vmatpush3.bf16.msra.mxu0 %v1471_v31 }
  0x40   : > { %1342 = vmatprep.subr.bf16.mxu0 %v1562_v1 }
  0x43   : > { %1343 = vmatpush3.bf16.msra.mxu0 %v1473_v32 }
  0x44   : > { %1344 = vmatprep.subr.bf16.mxu0 %v1562_v1 }
  0x47   : > { %1345 = vmatpush3.bf16.msra.mxu0 %v1475_v33 }
  0x48   : > { %1346 = vmatprep.subr.bf16.mxu0 %v1562_v1 }
  0x4b   : > { %1347 = vmatpush3.bf16.msra.mxu0 %v1477_v37 }
  0x4e   : > { %1349 = vmatmul.mubr.msk.bf16.vlgmr.msra.gmra.mrb[0].mxu0 %vm1209_vm7, %v1210_v40 }
 0x103   : > { %v470_v41 = vpop.f32.mrb[0].mxu1 }
 0x104   : > { %v1310_v42 = vpop.f32.mrb[1].mxu1 }
 0x105   : > { %v473_v43 = vpop.f32.mrb[2].mxu1 }
 0x106   : > { %v1311_v44 = vpop.f32.mrb[3].mxu1 }
 0x121   : > { %v666_v45 = vpop.f32.mrb[0].mxu0 }
 0x122   : > { %v1388_v46 = vadd.f32 %v666_v45, %v470_v41  ;;  %v1350_v47 = vpop.f32.mrb[1].mxu0 }
 0x123   : > { %v669_v48 = vpop.f32.mrb[2].mxu0 }
 0x124   : > { %v1389_v49 = vadd.f32 %v669_v48, %v473_v43  ;;  %v1351_v50 = vpop.f32.mrb[3].mxu0  ;;  %v676_v51 = vsel %vm675_vm8, %v1388_v46, 0.0  ;;  %v689_v53 = vmul.f32 %v1388_v46, %v1388_v46 }
 0x126   : > { %v677_v52 = vsel %vm675_vm8, %v1389_v49, 0.0  ;;  %v690_v54 = vmul.f32 %v1389_v49, %v1389_v49  ;;  %v691_v57 = vsel %vm675_vm8, %v689_v53, 0.0 }
 0x127   : > { %v678_v55 = vadd.f32 %v677_v52, %v676_v51 }
 0x128   : > { %v692_v56 = vsel %vm675_vm8, %v690_v54, 0.0  ;;  %v1482_v54 = vld [vmem:[%s1951_s4] sm:$0xff]  }
 0x129   : > { %679 = vadd.xlane.f32.xlu0 %v678_v55  ;;  %v693_v58 = vadd.f32 %v692_v56, %v691_v57  ;;  %v1483_v56 = vld [vmem:[%s1951_s4 + $0x8] sm:$0xff]  }
 0x12d   : > { %694 = vadd.xlane.f32.xlu0 %v693_v58 }
 0x1b6   : > { %v680_v63 = vpop.xlane.xlu0 %679 }
 0x1b7   : > { %v681_v0 = vrot.slane %v680_v63, 4 }
 0x1b9   : > { %v682_v2 = vadd.f32 %v681_v0, %v680_v63  ;;  %v1486_v0 = vld [vmem:[%s1951_s4 + $0x40] sm:$0xff]  }
 0x1ba   : > { %v695_v3 = vpop.xlane.xlu0 %694 }
 0x1bb   : > { %v683_v4 = vrot.slane %v682_v2, 2  ;;  %v696_v5 = vrot.slane %v695_v3, 4 }
 0x1bd   : > { %v697_v6 = vadd.f32 %v696_v5, %v695_v3  ;;  %v684_v7 = vadd.f32 %v683_v4, %v682_v2  ;;  %v1487_v3 = vld [vmem:[%s1951_s4 + $0x48] sm:$0xff]  }
 0x1bf   : > { %v698_v8 = vrot.slane %v697_v6, 2  ;;  %v685_v9 = vrot.slane %v684_v7, 1 }
 0x1c1   : > { %v699_v10 = vadd.f32 %v698_v8, %v697_v6  ;;  %v686_v11 = vadd.f32 %v685_v9, %v684_v7  ;;  %v1488_v6 = vld [vmem:[%s1951_s4 + $0x50] sm:$0xff]   ;;  %v1489_v8 = vld [vmem:[%s1951_s4 + $0x58] sm:$0xff]  }
 0x1c3   : > { %1402 = vpush %v686_v11  ;;  %v700_v13 = vrot.slane %v699_v10, 1 }
 0x1c5   : > { %v701_v14 = vadd.f32 %v700_v13, %v699_v10 }
 0x1c7   : > { %1404 = vpush %v701_v14 }
 0x1f4   : > { %s1403_s26 = spop %1402 }
 0x1f5   : > { %v688_v15 = vstv %s1403_s26 }
 0x1f6   : > { %v704_v16 = vmul.f32 0.0009765625, %v688_v15 }
 0x1f8   : > { %s1405_s10 = spop %1404  ;;  %v706_v18 = vmul.f32 %v704_v16, %v704_v16 }
 0x1f9   : > { %v703_v17 = vstv %s1405_s10  ;;  %s1147_s10 = sshll.u32 %s308_s25, 4 }
 0x1fa   : > { %v705_v19 = vmul.f32 0.0009765625, %v703_v17 }
 0x1fc   : > { %v707_v20 = vsub.f32 %v705_v19, %v706_v18 }
 0x1fe   : > { %v708_v21 = vadd.f32 1e-05, %v707_v20 }
 0x200   : > { %1490 = vrsqrt.f32 %v708_v21 }
 0x20a   : > { %v1491_v24 = vpop.eup %1490 }
 0x20b   : > { %v711_v25 = vmul.f32 %v1491_v24, %v710_v22 }
 0x20d   : > { %v713_v27 = vmul.f32 %v711_v25, %v704_v16  ;;  %v719_v28 = vrot.slane %v711_v25, %v1827_v23 }
 0x20f   : > { %v714_v29 = vsub.f32 %v712_v26, %v713_v27  ;;  %v721_v30 = vmul.f32 %v1388_v46, %v719_v28  ;;  %v722_v31 = vmul.f32 %v1389_v49, %v719_v28 }
 0x211   : > { %v727_v32 = vrot.slane %v714_v29, %v1827_v23 }
 0x213   : > { %v729_v33 = vadd.f32 %v727_v32, %v721_v30  ;;  %v730_v34 = vadd.f32 %v727_v32, %v722_v31 }
 0x215   : > { %v733_v35 = vmul.f32 0.044715, %v729_v33  ;;  %v734_v37 = vmul.f32 0.044715, %v730_v34  ;;  %v731_v46 = vmul.f32 0.5, %v729_v33  ;;  %v732_v50 = vmul.f32 0.5, %v730_v34 }
 0x217   : > { %v735_v38 = vmul.f32 %v733_v35, %v729_v33  ;;  %v736_v39 = vmul.f32 %v734_v37, %v730_v34 }
 0x219   : > { %v737_v40 = vmul.f32 %v735_v38, %v729_v33  ;;  %v738_v41 = vmul.f32 %v736_v39, %v730_v34 }
 0x21b   : > { %v739_v42 = vadd.f32 %v737_v40, %v729_v33  ;;  %v740_v43 = vadd.f32 %v738_v41, %v730_v34  ;;  %v1026_v41 = vld [vmem:[%s1952_s5] sm:$0x1] }
 0x21d   : > { %v741_v44 = vmul.f32 0.7978846, %v739_v42  ;;  %v742_v45 = vmul.f32 0.7978846, %v740_v43 }
 0x21f   : > { %1492 = vtanh.f32 %v741_v44  ;;  %v1028_v44 = vld [vmem:[%s1953_s6] sm:$0x1] }
 0x220   : > { %1494 = vtanh.f32 %v742_v45 }
 0x229   : > { %v1493_v47 = vpop.eup %1492 }
 0x22a   : > { %v1495_v48 = vpop.eup %1494  ;;  %v745_v49 = vadd.f32 1.0, %v1493_v47 }
 0x22b   : > { %v746_v51 = vadd.f32 1.0, %v1495_v48 }
 0x22c   : > { %v747_v52 = vmul.f32 %v745_v49, %v731_v46 }
 0x22d   : > { %v748_v53 = vmul.f32 %v746_v51, %v732_v50  ;;  %v1243_v51 = vld [vmem:[%s319_s20] ss:$0 sm:$0xff] }
 0x22e   : > { %v749_v57 = vrot.slane %v747_v52, 7  ;;  %v755_v4 = vrot.slane %v747_v52, 1 }
 0x22f   : > { %v770_v55 = vpack.c.bf16 %v748_v53, %v747_v52  ;;  %v750_v58 = vrot.slane %v748_v53, 7  ;;  %v756_v5 = vrot.slane %v748_v53, 1 }
 0x231   : > { %1361 = vmatmul.mubr.msk.bf16.vlgmr.msra.gmra.mrb[4].mxu1 %vm675_vm8, %v770_v55  ;;  %v752_v60 = vsel %vm333_vm2, %v750_v58, %v749_v57  ;;  %v751_v62 = vsel %vm333_vm2, %v749_v57, %v750_v58  ;;  %v758_v7 = vsel %vm344_vm5, %v756_v5, %v755_v4  ;;  %v757_v9 = vsel %vm344_vm5, %v755_v4, %v756_v5 }
 0x232   : > { %1365 = vmatpush3.bf16.msra.mxu1 %v1482_v54  ;;  %1372 = vmatprep.mubr.msk.bf16.mxu1 %vm1563_vm0, %v1562_v1  ;;  %v753_v63 = vsel %vm325_vm1, %v752_v60, 0.0  ;;  %v760_v10 = vsel %vm328_vm6, %v758_v7, 0.0 }
 0x233   : > { %1366 = vmatprep.subr.bf16.mxu1 %v1562_v1  ;;  %v761_v2 = vpack.c.bf16 %v751_v62, %v753_v63  ;;  %v916_v11 = vpack.c.bf16 %v760_v10, %v757_v9 }
 0x236   : > { %1367 = vmatpush3.bf16.msra.mxu1 %v1483_v56 }
 0x237   : > { %1368 = vmatprep.subr.bf16.mxu1 %v1562_v1 }
 0x23a   : > { %1369 = vmatpush3.bf16.msra.mxu1 %v1484_v59 }
 0x23b   : > { %1370 = vmatprep.subr.bf16.mxu1 %v1562_v1 }
 0x23e   : > { %1371 = vmatpush3.bf16.msra.mxu1 %v1485_v61 }
 0x23f   : > { %1376 = vmatprep.subr.bf16.mxu1 %v1562_v1 }
 0x241   : > { %1373 = vmatmul.mubr.msk.bf16.vlgmr.msra.gmra.mrb[4].mxu1 %vm675_vm8, %v761_v2 }
 0x242   : > { %1377 = vmatpush3.bf16.msra.mxu1 %v1486_v0  ;;  %1384 = vmatprep.mubr.msk.bf16.mxu1 %vm1563_vm0, %v1562_v1 }
 0x243   : > { %1378 = vmatprep.subr.bf16.mxu1 %v1562_v1 }
 0x246   : > { %1379 = vmatpush3.bf16.msra.mxu1 %v1487_v3 }
 0x247   : > { %1380 = vmatprep.subr.bf16.mxu1 %v1562_v1 }
 0x24a   : > { %1381 = vmatpush3.bf16.msra.mxu1 %v1488_v6 }
 0x24b   : > { %1382 = vmatprep.subr.bf16.mxu1 %v1562_v1 }
 0x24e   : > { %1383 = vmatpush3.bf16.msra.mxu1 %v1489_v8 }
 0x251   : > { %1385 = vmatmul.mubr.msk.bf16.vlgmr.msra.gmra.mrb[4].mxu1 %vm675_vm8, %v916_v11 }
 0x324   : > { %v987_v13 = vpop.f32.mrb[4].mxu1 }
 0x325   : > { %v1386_v14 = vpop.f32.mrb[5].mxu1  ;;  %v1007_v18 = vmul.f32 %v987_v13, %v987_v13 }
 0x326   : > { %v990_v15 = vpop.f32.mrb[6].mxu1 }
 0x327   : > { %v1387_v16 = vpop.f32.mrb[7].mxu1  ;;  %v996_v17 = vadd.f32 %v990_v15, %v987_v13  ;;  %v1008_v19 = vmul.f32 %v990_v15, %v990_v15 }
 0x329   : > { %997 = vadd.xlane.f32.xlu1 %v996_v17  ;;  %v1009_v20 = vadd.f32 %v1008_v19, %v1007_v18 }
 0x32d   : > { %1010 = vadd.xlane.f32.xlu1 %v1009_v20 }
 0x3b6   : > { %v998_v1 = vpop.xlane.xlu1 %997 }
 0x3b7   : > { %v999_v12 = vrot.slane %v998_v1, 4 }
 0x3b9   : > { %v1000_v21 = vadd.f32 %v999_v12, %v998_v1 }
 0x3ba   : > { %v1011_v22 = vpop.xlane.xlu1 %1010 }
 0x3bb   : > { %v1001_v36 = vrot.slane %v1000_v21, 2  ;;  %v1012_v24 = vrot.slane %v1011_v22, 4 }
 0x3bd   : > { %v1013_v25 = vadd.f32 %v1012_v24, %v1011_v22  ;;  %v1002_v26 = vadd.f32 %v1001_v36, %v1000_v21 }
 0x3bf   : > { %v1014_v27 = vrot.slane %v1013_v25, 2  ;;  %v1003_v28 = vrot.slane %v1002_v26, 1 }
 0x3c1   : > { %v1015_v29 = vadd.f32 %v1014_v27, %v1013_v25  ;;  %v1004_v30 = vadd.f32 %v1003_v28, %v1002_v26 }
 0x3c3   : > { %1406 = vpush %v1004_v30  ;;  %v1016_v31 = vrot.slane %v1015_v29, 1 }
 0x3c5   : > { %v1017_v32 = vadd.f32 %v1016_v31, %v1015_v29 }
 0x3c7   : > { %1408 = vpush %v1017_v32 }
 0x3f4   : > { %s1407_s23 = spop %1406 }
 0x3f5   : > { %v1006_v33 = vstv %s1407_s23  ;;  %s310_s23 = scalar_lea.vmem [#allocation2], %s1147_s10 }
 0x3f6   : > { %v1020_v34 = vmul.f32 0.00048828125, %v1006_v33 }
 0x3f8   : > { %s1409_s24 = spop %1408  ;;  %v1022_v37 = vmul.f32 %v1020_v34, %v1020_v34 }
 0x3f9   : > { %v1019_v35 = vstv %s1409_s24  ;;  %s1072_s24 = sshll.u32 %s310_s23, 4  ;;  %s1904_s24 = int_to_ptr.vmem [resolvable:$true] %s1072_s24 }
 0x3fa   : > { %v1021_v38 = vmul.f32 0.00048828125, %v1019_v35  ;;  %s1498_s10 = scalar_lea.vmem %s1904_s24, 256  ;;  %p1505_p1 = scmp.lt.s32.totalorder %s1904_s24, %s1503_s17 }
 0x3fb   : > { %p1499_p12 = scmp.ne.s32.totalorder %s1904_s24, %s1498_s10  ;;  %p1506_p2 = scmp.lt.s32.totalorder %s1504_s18, %s1498_s10 }
 0x3fc   : > { %v1023_v39 = vsub.f32 %v1021_v38, %v1022_v37 }
 0x3fd   : > { %p1500_p13 = pnand %p1499_p12, %p1651_p5  ;;  %p1507_p3 = por %p1506_p2, %p1505_p1 }
 0x3fe   : > { %v1024_v40 = vadd.f32 1e-05, %v1023_v39 }
 0x3ff   : > { %p1501_p0 = pneg %p1500_p13 }
 0x400   : > { %1496 = vrsqrt.f32 %v1024_v40 }
 0x401   : > { %p1508_p4 = pnand %p1507_p3, %p1501_p0 }
 0x40a   : > { %v1497_v42 = vpop.eup %1496 }
 0x40b   : > { %v1027_v43 = vmul.f32 %v1497_v42, %v1026_v41 }
 0x40d   : > { %v1029_v45 = vmul.f32 %v1027_v43, %v1020_v34  ;;  %v1035_v47 = vrot.slane %v1027_v43, %v1827_v23 }
 0x40f   : > { %v1030_v48 = vsub.f32 %v1028_v44, %v1029_v45  ;;  %v1037_v46 = vmul.f32 %v1035_v47, %v987_v13  ;;  %v1038_v49 = vmul.f32 %v1035_v47, %v990_v15 }
 0x411   : > { %v1043_v50 = vrot.slane %v1030_v48, %v1827_v23 }
 0x413   : > { %v1045_v52 = vadd.f32 %v1043_v50, %v1037_v46  ;;  %v1046_v53 = vadd.f32 %v1043_v50, %v1038_v49 }
 0x415   : > { %v1054_v54 = vadd.f32 %v1243_v51, %v1045_v52  ;;  %v1055_v55 = vadd.f32 %v1243_v51, %v1046_v53 }
 0x417   : > { %1056 = vst [vmem:[%s310_s23] sm:$0xff] %v1054_v54  ;;  %1057 = vst [vmem:[%s310_s23 + $0x8] sm:$0xff] %v1055_v55 }
 0x418   : > { %1511 = shalt.err (!%p1508_p4)
}
 0x419   : > { %s1512_s25 = scalar_lea.hbm %s1902_s13, 256  ;;  %s1516_s22 = scalar_lea.hbm %s1955_s8, 512 }
 0x41a   : > { %p1513_p7 = scmp.ne.s32.totalorder %s1902_s13, %s1512_s25  ;;  %p1517_p10 = scmp.lt.u32.totalorder %s1902_s13, %s1955_s8 }
 0x41b   : > { %p1518_p11 = scmp.lt.u32.totalorder %s1516_s22, %s1512_s25  ;;  %p1520_p13 = scmp.lt.u32.totalorder %s1512_s25, %s1902_s13 }
 0x41c   : > { %p1514_p8 = pnand %p1513_p7, %p1651_p5 }
 0x41d   : > { %p1519_p12 = por %p1518_p11, %p1517_p10 }
 0x41e   : > { %p1515_p9 = pneg %p1514_p8 }
 0x41f   : > { %p1521_p0 = por %p1520_p13, %p1519_p12 }
 0x421   : > { %p1522_p1 = pnand %p1521_p0, %p1515_p9 }
 0x423   : > { %1525 = shalt.err (!%p1522_p1)
}
 0x424   : > { %s1566_s26 = smov 128   ;;  %s1567_s10 = smov 8  }
 0x425   : > { %1410 = dma.vmem_to_hbm [thread:$0]  (%p1651_p5), %s1904_s24, 256, %s1902_s13, %s1906_s9, %s1566_s26, %s1566_s26, %s1567_s10  }
 0x426 PF: > { %p1416_p2 = scmp.ge.s32.totalorder %s1560_s30, 2  ;;  %s1087_s12 = sand.u32 1, %s1548_s27  }
 0x427   : > { %s1088_s17 = scalar_lea.sflag [#allocation3], %s1087_s12 }
 0x428   : > { %p1413_p3 = pnand %p1416_p2, %p1655_p6 }
 0x42a   : > { %1543 = dma.done.wait (!%p1413_p3), %s1088_s17, 256  }
 0x42b   : > { %1545 = vsyncadd (!%p1413_p3), %s1088_s17, 4294967040  ;;  %p18_p4 = scmp.ge.s32.totalorder %s1638_s11, 4   ;;  %s1958_s27 = smov %s1552_s28 }
 0x42c   : > { %s1959_s28 = smov %s1556_s29  ;;  %s1960_s29 = smov %s1649_s14 }
 0x42d   : > { %s1961_s30 = smov %s1638_s11  ;;  %20 = sbr.rel (!%p18_p4) target bundleno = 3 (0x3), region = 94 }
 0x434   :  { %1093 = vsyncpa [#allocation3], 1 }
 0x435   :  { %1095 = vsyncpa [#allocation3 + $0x1], 1 }

</bundles_post_ra>
